<compile_context>
chip_gen: v7x
topology: tpu7x:2x2x1
jax: 0.10.0
libtpu: 0.0.40
codegen_flags: <defaults>
</compile_context>

<pallas_src>
import math
import functools

import numpy as np
import jax
import jax.numpy as jnp
from jax.experimental import pallas as pl
from jax.experimental.pallas import tpu as pltpu


# ----------------------------------------------------------------------------
# Generation-aware tiling / VMEM budget
# ----------------------------------------------------------------------------
def _query_vmem_capacity():
    try:
        info = pltpu.get_tpu_info()
        cap = getattr(info, "vmem_capacity_bytes", None)
        if cap:
            return int(cap)
    except Exception:
        pass
    return 64 << 20                    # conservative default (v7x: 64 MiB / TC)


_VMEM_CAPACITY = _query_vmem_capacity()
_VMEM_CAP = (_VMEM_CAPACITY * 3) // 4  # leave headroom for Mosaic internals

if _VMEM_CAPACITY >= (100 << 20):      # v5e / v6e: 128 MiB physical VMEM
    _TM, _TN, _TK = 256, 1024, 1024
else:                                  # v7x: 64 MiB physical VMEM
    _TM, _TN, _TK = 256, 512, 512


def _pick_tile(dim, pref, align, floor=None):
    """Largest `align`-multiple <= pref (and >= floor) dividing dim, else dim."""
    floor = floor or align
    pref = min(pref, dim)
    t = (pref // align) * align
    while t >= floor:
        if dim % t == 0:
            return t
        t -= align
    return dim


def _vmem_limit(need_bytes):
    return int(min(max(need_bytes + (2 << 20), 16 << 20), _VMEM_CAP))


# ----------------------------------------------------------------------------
# Fused tiled linear:  out = [residual +] act([LN(x)] @ w [+ b])
# ----------------------------------------------------------------------------
def fused_linear(x, w, b=None, *, ln=None, activation=None, residual=None,
                 out_dtype=None):
    """x: (M, K), w: (K, N), b: (N,) | None, residual: (M, N) | None.

    MXU operands are bf16 with fp32 accumulation.  LN / bias / QuickGELU /
    residual math is fp32 in-kernel.  When `ln` is given, the whole K axis is
    one tile so row statistics are computed in-kernel; the normalized bf16
    tile is cached in a VMEM scratch on the first N tile and reused.
    """
    M, K = x.shape
    N = w.shape[1]
    if out_dtype is None:
        out_dtype = x.dtype

    has_ln = ln is not None
    has_bias = b is not None
    has_res = residual is not None

    tm = _pick_tile(M, _TM, 8, 64)
    tn = _pick_tile(N, _TN, 128)
    tk = K if has_ln else _pick_tile(K, _TK, 128)
    grid = (M // tm, N // tn, K // tk)
    nk = grid[2]

    # Activations / weights / residual all travel as bf16 (halved HBM + VMEM
    # traffic).  LN statistics are computed from the bf16-rounded input.
    x_in = x.astype(jnp.bfloat16)
    w_in = w.astype(jnp.bfloat16)
    res_in = residual.astype(jnp.bfloat16) if has_res else None

    def kernel(*refs):
        refs = list(refs)
        x_ref = refs.pop(0)
        w_ref = refs.pop(0)
        b_ref = refs.pop(0) if has_bias else None
        if has_ln:
            g_ref = refs.pop(0)
            beta_ref = refs.pop(0)
        r_ref = refs.pop(0) if has_res else None
        o_ref = refs.pop(0)
        acc_ref = refs.pop(0)
        xn_ref = refs.pop(0) if has_ln else None

        j_id = pl.program_id(1)
        k_id = pl.program_id(2)

        @pl.when(k_id == 0)
        def _():
            acc_ref[...] = jnp.zeros_like(acc_ref)

        if has_ln:
            # LN computed once per row tile (first N tile) and cached; the
            # remaining N tiles only feed the MXU from the scratch.
            @pl.when(j_id == 0)
            def _():
                xv = x_ref[...].astype(jnp.float32)
                mean = jnp.mean(xv, axis=-1, keepdims=True)
                var = jnp.mean(jnp.square(xv - mean), axis=-1, keepdims=True)
                xn = (xv - mean) * jax.lax.rsqrt(var + 1e-5)
                xn = xn * g_ref[...] + beta_ref[...]
                xn_ref[...] = xn.astype(jnp.bfloat16)
            x_op = xn_ref[...]
        else:
            x_op = x_ref[...]

        acc_ref[...] += jnp.dot(x_op, w_ref[...],
                                preferred_element_type=jnp.float32)

        @pl.when(k_id == nk - 1)
        def _():
            acc = acc_ref[...]
            if has_bias:
                acc = acc + b_ref[...]
            if activation == "quick_gelu":      # x * sigmoid(1.702 x), EUP path
                acc = acc * jax.nn.sigmoid(1.702 * acc)
            if has_res:
                acc = acc + r_ref[...].astype(jnp.float32)
            o_ref[...] = acc.astype(o_ref.dtype)

    in_specs = [pl.BlockSpec((tm, tk), lambda i, j, k: (i, k)),
                pl.BlockSpec((tk, tn), lambda i, j, k: (k, j))]
    inputs = [x_in, w_in]
    if has_bias:
        in_specs.append(pl.BlockSpec((1, tn), lambda i, j, k: (0, j)))
        inputs.append(jnp.reshape(b, (1, N)).astype(jnp.float32))
    if has_ln:
        g, beta = ln
        in_specs.append(pl.BlockSpec((1, tk), lambda i, j, k: (0, k)))
        in_specs.append(pl.BlockSpec((1, tk), lambda i, j, k: (0, k)))
        inputs.append(jnp.reshape(g, (1, K)).astype(jnp.float32))
        inputs.append(jnp.reshape(beta, (1, K)).astype(jnp.float32))
    if has_res:
        in_specs.append(pl.BlockSpec((tm, tn), lambda i, j, k: (i, j)))
        inputs.append(res_in)

    scratch_shapes = [pltpu.VMEM((tm, tn), jnp.float32)]
    if has_ln:
        scratch_shapes.append(pltpu.VMEM((tm, tk), jnp.bfloat16))

    o_bytes = jnp.dtype(out_dtype).itemsize
    in_tile_bytes = (tm * tk * 2 + tk * tn * 2
                     + (tn * 4 if has_bias else 0)
                     + (2 * tk * 4 if has_ln else 0)
                     + (tm * tn * 2 if has_res else 0))
    scratch_bytes = tm * tn * 4 + (tm * tk * 2 if has_ln else 0)
    need = 2 * in_tile_bytes + 2 * tm * tn * o_bytes + scratch_bytes

    cost = pl.CostEstimate(
        flops=2 * M * N * K,
        transcendentals=(M * N if activation == "quick_gelu" else 0),
        bytes_accessed=(M * K * 2 + K * N * 2 + M * N * o_bytes
                        + (M * N * 2 if has_res else 0)))

    # The LN cache is written at j == 0 and read at j > 0, so the N axis must
    # stay sequential on one core; the M axis remains megacore-parallel.
    dims = (("parallel", "arbitrary", "arbitrary") if has_ln
            else ("parallel", "parallel", "arbitrary"))

    return pl.pallas_call(
        kernel,
        out_shape=jax.ShapeDtypeStruct((M, N), out_dtype),
        grid_spec=pltpu.PrefetchScalarGridSpec(
            num_scalar_prefetch=0,
            grid=grid,
            in_specs=in_specs,
            out_specs=pl.BlockSpec((tm, tn), lambda i, j, k: (i, j)),
            scratch_shapes=scratch_shapes),
        compiler_params=pltpu.CompilerParams(
            dimension_semantics=dims,
            vmem_limit_bytes=_vmem_limit(need)),
        cost_estimate=cost,
    )(*inputs)


# ----------------------------------------------------------------------------
# Standalone LayerNorm (only ln_pre of the vision tower needs it)
# ----------------------------------------------------------------------------
def layernorm(x2d, g, b, out_dtype=jnp.bfloat16):
    M, D = x2d.shape
    tm = _pick_tile(M, _TM, 8, 64)

    def kern(x_ref, g_ref, b_ref, o_ref):
        xv = x_ref[...].astype(jnp.float32)
        mean = jnp.mean(xv, axis=-1, keepdims=True)
        var = jnp.mean(jnp.square(xv - mean), axis=-1, keepdims=True)
        y = (xv - mean) * jax.lax.rsqrt(var + 1e-5)
        y = y * g_ref[...] + b_ref[...]
        o_ref[...] = y.astype(o_ref.dtype)

    return pl.pallas_call(
        kern,
        out_shape=jax.ShapeDtypeStruct((M, D), out_dtype),
        grid_spec=pltpu.PrefetchScalarGridSpec(
            num_scalar_prefetch=0,
            grid=(M // tm,),
            in_specs=[pl.BlockSpec((tm, D), lambda i: (i, 0)),
                      pl.BlockSpec((1, D), lambda i: (0, 0)),
                      pl.BlockSpec((1, D), lambda i: (0, 0))],
            out_specs=pl.BlockSpec((tm, D), lambda i: (i, 0))),
        compiler_params=pltpu.CompilerParams(
            dimension_semantics=("parallel",)),
    )(x2d, jnp.reshape(g, (1, D)).astype(jnp.float32),
      jnp.reshape(b, (1, D)).astype(jnp.float32))


# ----------------------------------------------------------------------------
# Multi-head attention, grid over (batch, head-group); head-group-major QKV
# ----------------------------------------------------------------------------
def _head_groups(D, n_heads):
    """Group heads so each group spans >= 128 lanes (lane-dense slabs)."""
    dh = D // n_heads
    gh = min(n_heads, max(1, 128 // dh))
    while n_heads % gh:
        gh -= 1
    return gh, gh * dh, n_heads // gh


def _qkv_group_perm(D, n_heads):
    """Column permutation making the fused QKV output head-group-major:
       [Q_g0 | K_g0 | V_g0 | Q_g1 | K_g1 | V_g1 | ...]."""
    gh, gd, ng = _head_groups(D, n_heads)
    perm = []
    for g in range(ng):
        for part in range(3):            # Q, K, V
            base = part * D + g * gd
            perm.extend(range(base, base + gd))
    return np.asarray(perm, np.int32)


def attention(qkv, n_heads, causal):
    """qkv: (B, T, 3*D) bf16 in head-group-major layout -> (B, T, D) bf16."""
    B, T, D3 = qkv.shape
    D = D3 // 3
    dh = D // n_heads
    gh, gd, ng = _head_groups(D, n_heads)
    scale = 1.0 / math.sqrt(dh)

    def kern(qkv_ref, o_ref):
        blk = qkv_ref[0]                               # (T, 3*gd) bf16
        q = blk[:, 0 * gd:1 * gd]
        k = blk[:, 1 * gd:2 * gd]
        v = blk[:, 2 * gd:3 * gd]
        if causal:
            row = jax.lax.broadcasted_iota(jnp.int32, (T, T), 0)
            col = jax.lax.broadcasted_iota(jnp.int32, (T, T), 1)
            mask = col > row                           # built once per grid point
        outs = []
        for h in range(gh):                            # small static loop (<=2 for CLIP)
            sl = slice(h * dh, (h + 1) * dh)
            s = jax.lax.dot_general(q[:, sl], k[:, sl], (((1,), (1,)), ((), ())),
                                    preferred_element_type=jnp.float32) * scale
            if causal:
                s = jnp.where(mask, jnp.float32(-1e9), s)
            s = s - jnp.max(s, axis=-1, keepdims=True)
            p = jnp.exp(s)                             # unnormalized probs (<= 1)
            inv = pl.reciprocal(jnp.sum(p, axis=-1, keepdims=True), approx=True)
            oh = jax.lax.dot_general(p.astype(blk.dtype), v[:, sl],
                                     (((1,), (0,)), ((), ())),
                                     preferred_element_type=jnp.float32)
            outs.append(oh * inv)                      # deferred softmax normalization
        out = outs[0] if gh == 1 else jnp.concatenate(outs, axis=-1)
        o_ref[0] = out.astype(o_ref.dtype)             # one lane-dense (T, gd) store

    need = 2 * T * 3 * gd * 2 + 2 * T * gd * 2 + 3 * T * T * 4 + T * gd * 4
    cost = pl.CostEstimate(
        flops=4 * B * n_heads * T * T * dh,
        transcendentals=B * n_heads * T * T,
        bytes_accessed=B * T * D3 * 2 + B * T * D * 2)

    return pl.pallas_call(
        kern,
        out_shape=jax.ShapeDtypeStruct((B, T, D), jnp.bfloat16),
        grid_spec=pltpu.PrefetchScalarGridSpec(
            num_scalar_prefetch=0,
            grid=(B, ng),
            in_specs=[pl.BlockSpec((1, T, 3 * gd), lambda b, g: (b, 0, g))],
            out_specs=pl.BlockSpec((1, T, gd), lambda b, g: (b, 0, g))),
        compiler_params=pltpu.CompilerParams(
            dimension_semantics=("parallel", "parallel"),
            vmem_limit_bytes=_vmem_limit(need)),
        cost_estimate=cost,
    )(qkv)


# ----------------------------------------------------------------------------
# Final CLIP head: normalize features, scaled logits, softmax
# ----------------------------------------------------------------------------
def clip_head(image_features, text_features, logit_scale):
    B, D = image_features.shape
    C = text_features.shape[0]

    def kern(img_ref, txt_ref, ls_ref, o_ref):
        img = img_ref[...].astype(jnp.float32)
        txt = txt_ref[...].astype(jnp.float32)
        img = img * jax.lax.rsqrt(jnp.sum(img * img, axis=-1, keepdims=True) + 1e-12)
        txt = txt * jax.lax.rsqrt(jnp.sum(txt * txt, axis=-1, keepdims=True) + 1e-12)
        scale = jnp.exp(ls_ref[0])
        logits = scale * jax.lax.dot_general(          # contract dim 1 of both: no transpose
            img, txt, (((1,), (1,)), ((), ())), preferred_element_type=jnp.float32)
        logits = logits - jnp.max(logits, axis=-1, keepdims=True)
        e = jnp.exp(logits)
        o_ref[...] = (e / jnp.sum(e, axis=-1, keepdims=True)).astype(o_ref.dtype)

    return pl.pallas_call(
        kern,
        out_shape=jax.ShapeDtypeStruct((B, C), jnp.float32),
        in_specs=[
            pl.BlockSpec(memory_space=pltpu.MemorySpace.VMEM),
            pl.BlockSpec(memory_space=pltpu.MemorySpace.VMEM),
            pl.BlockSpec(memory_space=pltpu.MemorySpace.SMEM),
        ],
        out_specs=pl.BlockSpec(memory_space=pltpu.MemorySpace.VMEM),
    )(image_features, text_features,
      jnp.reshape(logit_scale, (1,)).astype(jnp.float32))


# ----------------------------------------------------------------------------
# Transformer building block (CLIP ResidualAttentionBlock, pre-norm), fused
# ----------------------------------------------------------------------------
def residual_block(x, p, n_heads, causal):
    B, T, D = x.shape
    x2 = x.reshape(B * T, D).astype(jnp.bfloat16)       # bf16 residual stream
    # LN1 fused into the QKV projection; bf16 output feeds attention.
    qkv = fused_linear(x2, p["w_qkv"], p["b_qkv"],
                       ln=(p["ln1_g"], p["ln1_b"]), out_dtype=jnp.bfloat16)
    attn = attention(qkv.reshape(B, T, 3 * D), n_heads, causal)   # (B,T,D) bf16
    # Output projection with residual add fused.
    x2 = fused_linear(attn.reshape(B * T, D), p["w_out"], p["b_out"],
                      residual=x2, out_dtype=jnp.bfloat16)
    # LN2 fused into the MLP up-projection with QuickGELU.
    h = fused_linear(x2, p["w_fc"], p["b_fc"],
                     ln=(p["ln2_g"], p["ln2_b"]),
                     activation="quick_gelu", out_dtype=jnp.bfloat16)
    # MLP down-projection with residual add fused.
    x2 = fused_linear(h, p["w_proj"], p["b_proj"], residual=x2,
                      out_dtype=jnp.bfloat16)
    return x2.reshape(B, T, D)


# ----------------------------------------------------------------------------
# CLIP image encoder (ViT), text encoder, prompt learner
# ----------------------------------------------------------------------------
def patchify_nchw(image, patch):
    B, C, H, W = image.shape
    x = image.reshape(B, C, H // patch, patch, W // patch, patch)
    x = x.transpose(0, 2, 4, 1, 3, 5)                # B, Hg, Wg, C, p, p
    x = x.reshape(B, (H // patch) * (W // patch), C * patch * patch)
    return x


def image_encoder(image, params, cfg, pos_embedding=False):
    B = image.shape[0]
    D = cfg["vision_width"]
    x = patchify_nchw(image, cfg["patch"])           # (B, nP, C*p*p)
    nP = x.shape[1]
    # patch-embedding conv (stride == kernel == patch) == bias-less GEMM
    x = fused_linear(x.reshape(B * nP, -1), params["conv1_w"]).reshape(B, nP, D)
    cls = jnp.broadcast_to(params["class_embedding"][None, None, :], (B, 1, D))
    x = jnp.concatenate([cls, x.astype(jnp.float32)], axis=1)      # (B, 1+nP, D)
    if pos_embedding:
        x = x + params["vis_pos"][None]
    T = x.shape[1]
    x = layernorm(x.reshape(B * T, D), params["ln_pre_g"],
                  params["ln_pre_b"]).reshape(B, T, D)             # bf16
    for blk in params["vis_blocks"]:
        x = residual_block(x, blk, cfg["vision_heads"], causal=False)
    cls_tok = x[:, 0, :]
    # ln_post fused into the bias-less visual projection
    feats = fused_linear(cls_tok, params["visual_proj"],
                         ln=(params["ln_post_g"], params["ln_post_b"]),
                         out_dtype=jnp.float32)
    return feats                                      # (B, embed_dim) fp32


def prompt_learner_forward(params, cfg):
    n_cls, n_ctx = cfg["n_cls"], cfg["n_ctx"]
    dim = cfg["text_width"]
    ctx = params["ctx"]                               # (n_ctx, dim) generic ctx
    ctx = jnp.broadcast_to(ctx[None], (n_cls, n_ctx, dim))
    prefix, suffix = params["token_prefix"], params["token_suffix"]
    half = n_ctx // 2
    prompts = []
    for i in range(n_cls):                            # class_token_position='middle'
        nl = cfg["name_lens"][i]
        prompt = jnp.concatenate(
            [prefix[i:i + 1],                         # (1, 1, dim)  SOT
             ctx[i:i + 1, :half],                     # first half of context
             suffix[i:i + 1, :nl],                    # class-name tokens
             ctx[i:i + 1, half:],                     # second half of context
             suffix[i:i + 1, nl:]],                   # rest (".", EOT, pad)
            axis=1)
        prompts.append(prompt)
    return jnp.concatenate(prompts, axis=0)           # (n_cls, seq_len, dim)


def text_encoder(prompts, tokenized_prompts, params, cfg):
    x = prompts + params["text_pos"][None]
    B, T, D = x.shape
    for blk in params["text_blocks"]:
        x = residual_block(x, blk, cfg["text_heads"], causal=True)
    eot = jnp.argmax(tokenized_prompts, axis=-1)
    # LayerNorm is per-token, so gather the EOT token first and fuse ln_final
    # into the bias-less text projection.
    pooled = x[jnp.arange(B), eot]                    # (n_cls, D)
    feats = fused_linear(pooled, params["text_projection"],
                         ln=(params["ln_final_g"], params["ln_final_b"]),
                         out_dtype=jnp.float32)
    return feats                                      # (n_cls, embed_dim) fp32


def custom_clip_forward(image, params, cfg, pos_embedding=False):
    image_features = image_encoder(image, params, cfg, pos_embedding=pos_embedding)
    prompts = prompt_learner_forward(params, cfg)
    text_features = text_encoder(prompts, params["tokenized_prompts"], params, cfg)
    return clip_head(image_features, text_features, params["logit_scale"])


# ----------------------------------------------------------------------------
# Deterministic parameter init (synthetic stand-in for the CLIP checkpoint)
# ----------------------------------------------------------------------------
def _init_block(key, D, heads, std=0.02):
    ks = jax.random.split(key, 4)
    f32, bf16 = jnp.float32, jnp.bfloat16
    # NOTE: w_qkv / b_qkv are stored with columns permuted into the
    # head-group-major [Q_g | K_g | V_g] order expected by attention();
    # real CLIP checkpoint weights would need the same one-time permutation.
    perm = _qkv_group_perm(D, heads)
    w_qkv = (jax.random.normal(ks[0], (D, 3 * D), f32) * std)[:, perm]
    b_qkv = jnp.zeros((3 * D,), f32)[perm]
    return dict(
        ln1_g=jnp.ones((D,), f32), ln1_b=jnp.zeros((D,), f32),
        w_qkv=w_qkv.astype(bf16),
        b_qkv=b_qkv,
        w_out=(jax.random.normal(ks[1], (D, D), f32) * std).astype(bf16),
        b_out=jnp.zeros((D,), f32),
        ln2_g=jnp.ones((D,), f32), ln2_b=jnp.zeros((D,), f32),
        w_fc=(jax.random.normal(ks[2], (D, 4 * D), f32) * std).astype(bf16),
        b_fc=jnp.zeros((4 * D,), f32),
        w_proj=(jax.random.normal(ks[3], (4 * D, D), f32) * std).astype(bf16),
        b_proj=jnp.zeros((D,), f32),
    )


def init_params(key, cfg):
    f32, bf16 = jnp.float32, jnp.bfloat16
    std = 0.02
    keys = jax.random.split(key, 16)
    p = cfg["patch"]
    Dv, Dt, De = cfg["vision_width"], cfg["text_width"], cfg["embed_dim"]
    n_patches = (cfg["image_size"] // p) ** 2
    vis_seq = n_patches + 1
    seq_len, n_ctx, n_cls = cfg["seq_len"], cfg["n_ctx"], cfg["n_cls"]
    suffix_len = seq_len - 1 - n_ctx

    params = dict(
        # visual (matmul weights stored bf16 for the MXU / halved HBM traffic)
        conv1_w=(jax.random.normal(keys[0], (3 * p * p, Dv), f32) * std).astype(bf16),
        class_embedding=jax.random.normal(keys[1], (Dv,), f32) * std,
        vis_pos=jax.random.normal(keys[2], (vis_seq, Dv), f32) * std,
        ln_pre_g=jnp.ones((Dv,), f32), ln_pre_b=jnp.zeros((Dv,), f32),
        vis_blocks=[_init_block(k, Dv, cfg["vision_heads"]) for k in
                    jax.random.split(keys[3], cfg["vision_layers"])],
        ln_post_g=jnp.ones((Dv,), f32), ln_post_b=jnp.zeros((Dv,), f32),
        visual_proj=(jax.random.normal(keys[4], (Dv, De), f32) * std).astype(bf16),
        # prompt learner buffers / parameter
        ctx=jax.random.normal(keys[5], (n_ctx, Dt), f32) * std,
        token_prefix=jax.random.normal(keys[6], (n_cls, 1, Dt), f32) * std,
        token_suffix=jax.random.normal(keys[7], (n_cls, suffix_len, Dt), f32) * std,
        # text transformer
        text_pos=jax.random.normal(keys[8], (seq_len, Dt), f32) * std,
        text_blocks=[_init_block(k, Dt, cfg["text_heads"]) for k in
                     jax.random.split(keys[9], cfg["text_layers"])],
        ln_final_g=jnp.ones((Dt,), f32), ln_final_b=jnp.zeros((Dt,), f32),
        text_projection=(jax.random.normal(keys[10], (Dt, De), f32) * std).astype(bf16),
        logit_scale=jnp.array(math.log(1.0 / 0.07), f32),
    )

    # synthetic tokenized prompts: [SOT, n_ctx tokens, name tokens, '.', EOT, pad...]
    tok = []
    for nl in cfg["name_lens"]:
        row = [1] + [5] * n_ctx + [7] * nl + [3]            # SOT, ctx, name, '.'
        row = row + [999] + [0] * (seq_len - len(row) - 1)  # EOT (max id), pad
        tok.append(row)
    params["tokenized_prompts"] = jnp.asarray(tok, jnp.int32)
    return params


# ----------------------------------------------------------------------------
if __name__ == "__main__":
    cfg = dict(
        image_size=32, patch=8, vision_width=64, vision_layers=2, vision_heads=4,
        text_width=64, text_layers=2, text_heads=4,
        embed_dim=64, seq_len=16, n_ctx=6, n_cls=2, name_lens=[1, 2],
    )

    # --- Test A: K-accumulating tiled matmul (grid nk > 1) vs. JAX reference.
    kx, kw, kb = jax.random.split(jax.random.PRNGKey(1), 3)
    xt = jax.random.normal(kx, (16, 2 * _TK), jnp.float32)
    wt = jax.random.normal(kw, (2 * _TK, 256), jnp.float32) * 0.02
    bt = jax.random.normal(kb, (256,), jnp.float32) * 0.02
    out_t = jax.block_until_ready(fused_linear(xt, wt, bt, out_dtype=jnp.float32))
    ref_t = (xt.astype(jnp.bfloat16).astype(jnp.float32)
             @ wt.astype(jnp.bfloat16).astype(jnp.float32)) + bt
    err = float(jnp.max(jnp.abs(out_t - ref_t)))
    ref_max = float(jnp.max(jnp.abs(ref_t)))
    assert err < 1e-2 * (ref_max + 1e-6), (err, ref_max)

    # --- Test B: fused-LN GEMM with cached normalized tile across N tiles.
    klx, klw, klg, klb2, klbias = jax.random.split(jax.random.PRNGKey(2), 5)
    Ml, Kl, Nl = 16, 256, 2 * _TN
    xl = jax.random.normal(klx, (Ml, Kl), jnp.float32)
    wl = jax.random.normal(klw, (Kl, Nl), jnp.float32) * 0.02
    bl = jax.random.normal(klbias, (Nl,), jnp.float32) * 0.02
    gl = 1.0 + 0.1 * jax.random.normal(klg, (Kl,), jnp.float32)
    betal = 0.1 * jax.random.normal(klb2, (Kl,), jnp.float32)
    out_l = jax.block_until_ready(
        fused_linear(xl, wl, bl, ln=(gl, betal), out_dtype=jnp.float32))
    xb = xl.astype(jnp.bfloat16).astype(jnp.float32)
    mu = xb.mean(-1, keepdims=True)
    var = ((xb - mu) ** 2).mean(-1, keepdims=True)
    xn = ((xb - mu) * jax.lax.rsqrt(var + 1e-5)) * gl + betal
    ref_l = (xn.astype(jnp.bfloat16).astype(jnp.float32)
             @ wl.astype(jnp.bfloat16).astype(jnp.float32)) + bl
    err_l = float(jnp.max(jnp.abs(out_l - ref_l)))
    ref_l_max = float(jnp.max(jnp.abs(ref_l)))
    assert err_l < 1e-2 * (ref_l_max + 1e-6), (err_l, ref_l_max)

    # --- Test C: attention with multiple head groups vs. pure-JAX reference.
    Bt, Tt, Dh_, Ht = 2, 16, 256, 4          # dh=64 -> 2 heads/group, 2 groups
    kq = jax.random.PRNGKey(3)
    qkv_plain = jax.random.normal(kq, (Bt, Tt, 3 * Dh_), jnp.float32).astype(jnp.bfloat16)
    perm_t = _qkv_group_perm(Dh_, Ht)
    out_a = jax.block_until_ready(attention(qkv_plain[..., perm_t], Ht, causal=True))
    qf = qkv_plain[..., :Dh_].astype(jnp.float32)
    kf = qkv_plain[..., Dh_:2 * Dh_].astype(jnp.float32)
    vf = qkv_plain[..., 2 * Dh_:].astype(jnp.float32)
    dh_t = Dh_ // Ht
    qh = qf.reshape(Bt, Tt, Ht, dh_t).transpose(0, 2, 1, 3)
    kh = kf.reshape(Bt, Tt, Ht, dh_t).transpose(0, 2, 1, 3)
    vh = vf.reshape(Bt, Tt, Ht, dh_t).transpose(0, 2, 1, 3)
    s_ref = jnp.einsum("bhqd,bhkd->bhqk", qh, kh) / math.sqrt(dh_t)
    tri = jnp.triu(jnp.ones((Tt, Tt), bool), k=1)
    s_ref = jnp.where(tri[None, None], -1e9, s_ref)
    p_ref = jax.nn.softmax(s_ref, axis=-1)
    ref_a = jnp.einsum("bhqk,bhkd->bhqd", p_ref, vh).transpose(0, 2, 1, 3)
    ref_a = ref_a.reshape(Bt, Tt, Dh_)
    err_a = float(jnp.max(jnp.abs(out_a.astype(jnp.float32) - ref_a)))
    assert err_a < 1e-1, err_a

    # --- Full forward pass.
    root = jax.random.PRNGKey(0)
    k_params, k_img = jax.random.split(root)
    params = init_params(k_params, cfg)
    image = jax.random.normal(k_img, (2, 3, cfg["image_size"], cfg["image_size"]),
                              jnp.float32)

    fwd = jax.jit(functools.partial(custom_clip_forward, cfg=cfg, pos_embedding=False))
    probs = fwd(image, params)
    probs = jax.block_until_ready(probs)

    assert probs.shape == (2, cfg["n_cls"])
    # rows of a softmax must sum to 1
    assert bool(jnp.all(jnp.abs(jnp.sum(probs, axis=-1) - 1.0) < 1e-4))
    assert bool(jnp.all(jnp.isfinite(probs)))
    print("KERNEL_OK")
</pallas_src>

<mosaic_0001>
module attributes {stable_mosaic.version = 11 : i64} {
  func.func @kernel(%arg0: i32, %arg1: i32, %arg2: i32, %arg3: memref<16x512xbf16, #tpu.memory_space<vmem>>, %arg4: memref<512x256xbf16, #tpu.memory_space<vmem>>, %arg5: memref<1x256xf32, #tpu.memory_space<vmem>>, %arg6: memref<16x256xf32, #tpu.memory_space<vmem>>, %arg7: memref<16x256xf32, #tpu.memory_space<vmem>>) attributes {dimension_semantics = [#tpu.dimension_semantics<parallel>, #tpu.dimension_semantics<parallel>, #tpu.dimension_semantics<arbitrary>], iteration_bounds = array<i64: 1, 1, 2>, scalar_prefetch = 0 : i64, scratch_operands = 1 : i64, tpu.core_type = #tpu.core_type<tc>, window_params = [{transform_indices = @transform_0, window_bounds = array<i64: 16, 512>}, {transform_indices = @transform_1, window_bounds = array<i64: 512, 256>}, {transform_indices = @transform_2, window_bounds = array<i64: 1, 256>}, {transform_indices = @transform_3, window_bounds = array<i64: 16, 256>}]} {
    %c0_i32 = arith.constant 0 : i32
    %0 = arith.cmpi eq, %arg2, %c0_i32 : i32
    %1 = arith.extui %0 : i1 to i32
    %c0_i32_0 = arith.constant 0 : i32
    %2 = arith.cmpi ne, %1, %c0_i32_0 : i32
    scf.if %2 {
      %cst_9 = arith.constant 0.000000e+00 : f32
      %12 = vector.broadcast %cst_9 : f32 to vector<16x256xf32>
      %c0_10 = arith.constant 0 : index
      %c0_11 = arith.constant 0 : index
      %13 = vector.load %arg7[%c0_10, %c0_11] : memref<16x256xf32, #tpu.memory_space<vmem>>, vector<16x256xf32>
      tpu.vector_store %arg7[%c0_10, %c0_11], %12 {strides = array<i32>} : memref<16x256xf32, #tpu.memory_space<vmem>>, vector<16x256xf32>,
    } else {
    }
    %c0 = arith.constant 0 : index
    %c0_1 = arith.constant 0 : index
    %3 = vector.load %arg3[%c0, %c0_1] : memref<16x512xbf16, #tpu.memory_space<vmem>>, vector<16x512xbf16>
    %c0_2 = arith.constant 0 : index
    %c0_3 = arith.constant 0 : index
    %4 = vector.load %arg7[%c0_2, %c0_3] : memref<16x256xf32, #tpu.memory_space<vmem>>, vector<16x256xf32>
    %c0_4 = arith.constant 0 : index
    %c0_5 = arith.constant 0 : index
    %5 = vector.load %arg4[%c0_4, %c0_5] : memref<512x256xbf16, #tpu.memory_space<vmem>>, vector<512x256xbf16>
    %cst = arith.constant dense<0.000000e+00> : vector<16x256xf32>
    %6 = tpu.matmul %3, %5, %cst {dimension_numbers = #tpu.dot_dimension_numbers<[1], [0], [0], [1], [0, 0, 1, 1], [], []>} : vector<16x512xbf16>, vector<512x256xbf16>, vector<16x256xf32> -> vector<16x256xf32>
    %7 = arith.addf %4, %6 : vector<16x256xf32>
    %c0_6 = arith.constant 0 : index
    %c0_7 = arith.constant 0 : index
    %8 = vector.load %arg7[%c0_6, %c0_7] : memref<16x256xf32, #tpu.memory_space<vmem>>, vector<16x256xf32>
    tpu.vector_store %arg7[%c0_6, %c0_7], %7 {strides = array<i32>} : memref<16x256xf32, #tpu.memory_space<vmem>>, vector<16x256xf32>,
    %c1_i32 = arith.constant 1 : i32
    %9 = arith.cmpi eq, %arg2, %c1_i32 : i32
    %10 = arith.extui %9 : i1 to i32
    %c0_i32_8 = arith.constant 0 : i32
    %11 = arith.cmpi ne, %10, %c0_i32_8 : i32
    scf.if %11 {
      %c0_9 = arith.constant 0 : index
      %c0_10 = arith.constant 0 : index
      %12 = vector.load %arg7[%c0_9, %c0_10] : memref<16x256xf32, #tpu.memory_space<vmem>>, vector<16x256xf32>
      %c0_11 = arith.constant 0 : index
      %c0_12 = arith.constant 0 : index
      %13 = vector.load %arg5[%c0_11, %c0_12] : memref<1x256xf32, #tpu.memory_space<vmem>>, vector<1x256xf32>
      %14 = vector.broadcast %13 : vector<1x256xf32> to vector<16x256xf32>
      %15 = arith.addf %12, %14 : vector<16x256xf32>
      %c0_13 = arith.constant 0 : index
      %c0_14 = arith.constant 0 : index
      %16 = vector.load %arg6[%c0_13, %c0_14] : memref<16x256xf32, #tpu.memory_space<vmem>>, vector<16x256xf32>
      tpu.vector_store %arg6[%c0_13, %c0_14], %15 {strides = array<i32>} : memref<16x256xf32, #tpu.memory_space<vmem>>, vector<16x256xf32>,
    } else {
    }
    return
  }
  func.func @transform_0(%arg0: i32, %arg1: i32, %arg2: i32) -> (i32, i32) {
    %c0_i32 = arith.constant 0 : i32
    return %arg0, %arg2 : i32, i32
  }
  func.func @transform_1(%arg0: i32, %arg1: i32, %arg2: i32) -> (i32, i32) {
    %c0_i32 = arith.constant 0 : i32
    return %arg2, %arg1 : i32, i32
  }
  func.func @transform_2(%arg0: i32, %arg1: i32, %arg2: i32) -> (i32, i32) {
    %c0_i32 = arith.constant 0 : i32
    %c0_i32_0 = arith.constant 0 : i32
    return %c0_i32, %arg1 : i32, i32
  }
  func.func @transform_3(%arg0: i32, %arg1: i32, %arg2: i32) -> (i32, i32) {
    %c0_i32 = arith.constant 0 : i32
    return %arg0, %arg1 : i32, i32
  }
}

</mosaic_0001>

<bundles_post_ra>
// kernel: tpu_custom_call.1
= control target key start
LH: loop header
LB: loop body
LE: loop exit
PB: predicated region body
PF: predicated region fallthrough
CT: control target
= control target key end

     0   :  { %8 = vsyncpa [#allocation4], 0  ;;  %s1668_s0 = inlined_call_operand.hbm [shape: bf16[16,1024], index: 0, kind: input, shape index: {}]   ;;  %s1669_s1 = inlined_call_operand.hbm [shape: bf16[1024,256], index: 1, kind: input, shape index: {}]   ;;  %s1670_s2 = inlined_call_operand.vmem [shape: f32[1,256], index: 2, kind: input, shape index: {}]   ;;  %s1671_s3 = inlined_call_operand.hbm [shape: f32[16,256], index: 3, kind: output, shape index: {}]  }
   0x1   :  { %10 = vsyncpa [#allocation4 + $0x1], 0 }
   0x2   :  { %11 = vsyncpa [#allocation7], 0 }
   0x3   :  { %13 = vsyncpa [#allocation7 + $0x1], 0 }
   0x4   :  { %14 = vsyncpa [#allocation5], 0  ;;  %s1392_s12 = smov 0   ;;  %s1394_s13 = smov 0  }
   0x5   :  { %s1396_s14 = smov 0   ;;  %s1398_s15 = smov 0  }
   0x6   :  { %s1400_s16 = smov 0   ;;  %s1402_s17 = smov 0  }
   0x7 LB: > { %s943_s18 = sadd.s32 4294967295, %s1359_s17   ;;  %s32_s19 = sadd.s32 1, %s1355_s16  ;;  %s1359_s17 = sphi %s1402_s17, %s20_s17   ;;  %s1355_s16 = sphi %s1400_s16, %s1684_s16   ;;  %s1351_s15 = sphi %s1398_s15, %s1683_s15   ;;  %s1347_s14 = sphi %s1396_s14, %s1682_s14   ;;  %s1343_s13 = sphi %s1394_s13, %s1681_s13   ;;  %s1339_s12 = sphi %s1392_s12, %s1680_s12  }
   0x8   : > { %p33_p0 = scmp.ge.s32.totalorder %s32_s19, 2  ;;  %s48_s20 = sadd.s32 1, %s1347_s14 }
   0x9   : > { %p55_p1 = scmp.ne.s32.totalorder %s1347_s14, %s1343_s13  ;;  %p56_p2 = scmp.eq.s32.totalorder %s1359_s17, 0 }
   0xa   : > { %s1686_s19 = smov (%p33_p0, %s32_s19), 0  ;;  %p61_p4 = scmp.ne.s32.totalorder %s1343_s13, %s1339_s12 }
   0xb   : > { %p1428_p3 = por %p56_p2, %p55_p1  ;;  %s44_s22 = ssub.s32 %s1355_s16, %s1686_s19 }
   0xc   : > { %p62_p5 = scmp.eq.s32.totalorder %s943_s18, 0  ;;  %p46_p6 = scmp.eq.s32.totalorder %s44_s22, 0 }
   0xd   : > { %p1053_p8 = scmp.lt.s32.totalorder %s1359_s17, 2  ;;  %s1446_s25 = sand.u32 1, %s1347_s14  }
   0xe   : > { %p1437_p7 = por %p62_p5, %p61_p4  ;;  %s1031_s26 = sshll.u32 %s1355_s16, 8 }
   0xf   : > { %s1443_s24 = scalar_select %p46_p6, %s1347_s14, %s48_s20  }
  0x10   : > { %s1674_s23 = scalar_select %p1437_p7, 1, 0 }
  0x11   : > { %s947_s27 = sshll.u32 %s1446_s25, 5  ;;  %s1453_s30 = scalar_lea.hbm %s1668_s0, %s1031_s26 }
  0x12   : > { %s179_s4 = scalar_lea.vmem [#allocation3], %s947_s27  ;;  %p1457_p9 = pnand %p1053_p8, %p1428_p3 }
  0x13   : > { %s189_s5 = sshll.u32 %s179_s4, 4  ;;  %s176_s7 = scalar_lea.sflag [#allocation4], %s1446_s25  ;;  %s1461_s5 = int_to_ptr.vmem [resolvable:$true] %s189_s5 }
  0x14   : > { %s1215_s8 = scalar_lea.hbm %s1453_s30, 512  ;;  %p1217_p12 = pneg %p1457_p9 }
  0x15   : > { %p1216_p11 = scmp.ne.s32.totalorder %s1453_s30, %s1215_s8  ;;  %s1220_s11 = scalar_lea.hbm %s1668_s0, 1024 }
  0x16   : > { %p1221_p1 = scmp.lt.u32.totalorder %s1453_s30, %s1668_s0  ;;  %p1222_p2 = scmp.lt.u32.totalorder %s1220_s11, %s1215_s8 }
  0x17   : > { %p1218_p13 = pnand %p1217_p12, %p1216_p11  ;;  %p1224_p4 = scmp.lt.u32.totalorder %s1215_s8, %s1453_s30 }
  0x18   : > { %p1223_p3 = por %p1222_p2, %p1221_p1 }
  0x19   : > { %p1219_p0 = pneg %p1218_p13 }
  0x1a   : > { %p1225_p5 = por %p1224_p4, %p1223_p3 }
  0x1c   : > { %p1226_p6 = pnand %p1225_p5, %p1219_p0 }
  0x1e   : > { %1229 = shalt.err (!%p1226_p6)
}
  0x1f   : > { %s1230_s21 = scalar_lea.vmem %s1461_s5, 512  ;;  %s1361_s22 = smov [#allocation3]  }
  0x20   : > { %p1231_p8 = scmp.ne.s32.totalorder %s1461_s5, %s1230_s21  ;;  %s1235_s26 = sshll.u32 %s1361_s22, 4  ;;  %s1236_s26 = int_to_ptr.vmem [resolvable:$false] %s1235_s26 }
  0x21   : > { %s1237_s27 = scalar_lea.vmem %s1236_s26, 1024  ;;  %p1238_p10 = scmp.lt.s32.totalorder %s1461_s5, %s1236_s26 }
  0x22   : > { %p1233_p11 = pnand %p1231_p8, %p1217_p12  ;;  %p1239_p1 = scmp.lt.s32.totalorder %s1237_s27, %s1230_s21 }
  0x24   : > { %p1234_p13 = pneg %p1233_p11  ;;  %p1240_p2 = por %p1239_p1, %p1238_p10 }
  0x26   : > { %p1241_p3 = pnand %p1240_p2, %p1234_p13 }
  0x28   : > { %1244 = shalt.err (!%p1241_p3)
}
  0x29   : > { %s1362_s28 = smov 512   ;;  %s1363_s29 = smov 256  }
  0x2a   : > { %s1364_s4 = smov 16   ;;  %p221_p0 = scmp.lt.s32.totalorder %s1359_s17, 3 }
  0x2b   : > { %1049 = dma.hbm_to_vmem [thread:$0]  (!%p1457_p9), %s1453_s30, 512, %s1461_s5, %s176_s7, %s1362_s28, %s1363_s29, %s1364_s4  }
  0x2c   : > { %s950_s8 = sshll.u32 %s1446_s25, 9  ;;  %s1033_s9 = sshll.u32 %s1355_s16, 13 }
  0x2d   : > { %p1676_p10 = scmp.ge.s32.totalorder %s1359_s17, 1  ;;  %s1504_s20 = scalar_lea.hbm %s1669_s1, %s1033_s9 }
  0x2e   : > { %s203_s21 = scalar_lea.vmem [#allocation6], %s950_s8  ;;  %s200_s30 = scalar_lea.sflag [#allocation7], %s1446_s25 }
  0x2f   : > { %p1497_p4 = pnand %p1676_p10, %p221_p0  ;;  %s213_s22 = sshll.u32 %s203_s21, 4  ;;  %s1506_s22 = int_to_ptr.vmem [resolvable:$true] %s213_s22 }
  0x30   : > { %s1245_s5 = scalar_lea.hbm %s1504_s20, 8192  ;;  %s1250_s27 = scalar_lea.hbm %s1669_s1, 16384 }
  0x31   : > { %p1246_p5 = scmp.ne.s32.totalorder %s1504_s20, %s1245_s5  ;;  %p1251_p11 = scmp.lt.u32.totalorder %s1504_s20, %s1669_s1 }
  0x32   : > { %p1252_p13 = scmp.lt.u32.totalorder %s1250_s27, %s1245_s5  ;;  %p1254_p2 = scmp.lt.u32.totalorder %s1245_s5, %s1504_s20 }
  0x33   : > { %p1248_p6 = pnand %p1246_p5, %p1217_p12 }
  0x34   : > { %p1253_p1 = por %p1252_p13, %p1251_p11 }
  0x35   : > { %p1249_p8 = pneg %p1248_p6 }
  0x36   : > { %p1255_p3 = por %p1254_p2, %p1253_p1 }
  0x38   : > { %p1256_p0 = pnand %p1255_p3, %p1249_p8 }
  0x3a   : > { %1259 = shalt.err (!%p1256_p0)
}
  0x3b   : > { %s1260_s4 = scalar_lea.vmem %s1506_s22, 8192  ;;  %s1365_s8 = smov [#allocation6]  }
  0x3c   : > { %p1261_p10 = scmp.ne.s32.totalorder %s1506_s22, %s1260_s4  ;;  %s1265_s9 = sshll.u32 %s1365_s8, 4  ;;  %s1266_s9 = int_to_ptr.vmem [resolvable:$false] %s1265_s9 }
  0x3d   : > { %s1267_s11 = scalar_lea.vmem %s1266_s9, 16384  ;;  %p1268_p7 = scmp.lt.s32.totalorder %s1506_s22, %s1266_s9 }
  0x3e   : > { %p1263_p5 = pnand %p1261_p10, %p1217_p12  ;;  %p1269_p11 = scmp.lt.s32.totalorder %s1267_s11, %s1260_s4 }
  0x40   : > { %p1264_p6 = pneg %p1263_p5  ;;  %p1270_p13 = por %p1269_p11, %p1268_p7 }
  0x42   : > { %p1271_p1 = pnand %p1270_p13, %p1264_p6 }
  0x44   : > { %1274 = shalt.err (!%p1271_p1)
}
  0x45   : > { %s1366_s12 = smov 128   ;;  %s1367_s21 = smov 8  }
  0x46   : > { %1052 = dma.hbm_to_vmem [thread:$0]  (!%p1457_p9), %s1504_s20, 8192, %s1506_s22, %s200_s30, %s1366_s12, %s1366_s12, %s1367_s21  }
  0x47   : > { %225 = sbr.rel (%p1497_p4) target bundleno = 413 (0x19d), region = 32  ;;  %s227_s5 = sand.u32 (!%p1497_p4), 1, %s1343_s13  }
  0x48   : > { %s955_s7 = sshll.u32 (!%p1497_p4), %s227_s5, 5  ;;  %s228_s26 = scalar_lea.sflag (!%p1497_p4), [#allocation4], %s227_s5 }
  0x49   : > { %s1537_s27 = scalar_lea.vmem (!%p1497_p4), [#allocation3], %s955_s7  ;;  %p1678_p7 = scmp.ne.s32.totalorder (!%p1497_p4), %s1674_s23, 0 }
  0x4e   : > { %1326 = dma.done.wait (%p1678_p7), %s228_s26, 512  }
  0x4f   : > { %1328 = vsyncadd (%p1678_p7), %s228_s26, 4294966784  ;;  %s956_s28 = sshll.u32 %s227_s5, 9  ;;  %s237_s6 = scalar_lea.sflag [#allocation7], %s227_s5 }
  0x50   : > { %s1543_s25 = scalar_lea.vmem [#allocation6], %s956_s28 }
  0x51   : > { %1330 = dma.done.wait (%p1678_p7), %s237_s6, 8192  }
  0x52   : > { %1332 = vsyncadd (%p1678_p7), %s237_s6, 4294959104  ;;  %p957_p9 = scmp.ne.s32.totalorder %s1351_s15, 0 }
  0x53   : > { %v1368_v0 = vmov (!%p957_p9), 0.0  }
  0x54   : > { %281 = sbr.rel (%p957_p9) target bundleno = 91 (0x5b), region = 44  ;;  %282 = vst [vmem:[#allocation2] sm:$0xff] (!%p957_p9), %v1368_v0  ;;  %283 = vst [vmem:[#allocation2 + $0x8] sm:$0xff] (!%p957_p9), %v1368_v0 }
  0x55   : > { %284 = vst [vmem:[#allocation2 + $0x10] sm:$0xff] (!%p957_p9), %v1368_v0  ;;  %285 = vst [vmem:[#allocation2 + $0x18] sm:$0xff] (!%p957_p9), %v1368_v0 }
  0x5b PF: > { %v1113_v1 = vld [vmem:[%s1543_s25 + $0x4] ss:$8 sps:$4 sm:$0xff]   ;;  %v1117_v3 = vld [vmem:[%s1543_s25] ss:$8 sps:$4 sm:$0xff]   ;;  %v1119_v5 = vld [vmem:[%s1543_s25 + $0x14] ss:$8 sps:$4 sm:$0xff]  }
  0x5c   : > { %v1115_v2 = vld [vmem:[%s1543_s25 + $0x104] ss:$8 sps:$4 sm:$0xff]   ;;  %698 = vmatprep.subr.bf16.mxu1 %v1113_v1  ;;  %v1118_v4 = vld [vmem:[%s1543_s25 + $0x100] ss:$8 sps:$4 sm:$0xff]   ;;  %v1121_v6 = vld [vmem:[%s1543_s25 + $0x114] ss:$8 sps:$4 sm:$0xff]  }
  0x5d   : > { %741 = vmatprep.subr.bf16.mxu0 %v1115_v2  ;;  %699 = vmatpush1.bf16.msra.mxu1 %v1117_v3  ;;  %v1123_v7 = vld [vmem:[%s1543_s25 + $0x10] ss:$8 sps:$4 sm:$0xff]   ;;  %v1125_v9 = vld [vmem:[%s1543_s25 + $0x24] ss:$8 sps:$4 sm:$0xff]   ;;  %v1129_v11 = vld [vmem:[%s1543_s25 + $0x20] ss:$8 sps:$4 sm:$0xff]  }
  0x5e   : > { %742 = vmatpush1.bf16.msra.mxu0 %v1118_v4  ;;  %700 = vmatprep.subr.bf16.mxu1 %v1119_v5  ;;  %v1124_v8 = vld [vmem:[%s1543_s25 + $0x110] ss:$8 sps:$4 sm:$0xff]   ;;  %v1127_v10 = vld [vmem:[%s1543_s25 + $0x124] ss:$8 sps:$4 sm:$0xff]   ;;  %v1130_v12 = vld [vmem:[%s1543_s25 + $0x120] ss:$8 sps:$4 sm:$0xff]  }
  0x5f   : > { %743 = vmatprep.subr.bf16.mxu0 %v1121_v6  ;;  %v1131_v13 = vld [vmem:[%s1543_s25 + $0x34] ss:$8 sps:$4 sm:$0xff]   ;;  %v1135_v15 = vld [vmem:[%s1543_s25 + $0x30] ss:$8 sps:$4 sm:$0xff]   ;;  %v1137_v17 = vld [vmem:[%s1543_s25 + $0x44] ss:$8 sps:$4 sm:$0xff]  }
  0x60   : > { %v1133_v14 = vld [vmem:[%s1543_s25 + $0x134] ss:$8 sps:$4 sm:$0xff]   ;;  %v1136_v16 = vld [vmem:[%s1543_s25 + $0x130] ss:$8 sps:$4 sm:$0xff]   ;;  %v1139_v18 = vld [vmem:[%s1543_s25 + $0x144] ss:$8 sps:$4 sm:$0xff]  }
  0x61   : > { %701 = vmatpush1.bf16.msra.mxu1 %v1123_v7  ;;  %v1141_v19 = vld [vmem:[%s1543_s25 + $0x40] ss:$8 sps:$4 sm:$0xff]   ;;  %v1143_v21 = vld [vmem:[%s1543_s25 + $0x54] ss:$8 sps:$4 sm:$0xff]   ;;  %v1147_v23 = vld [vmem:[%s1543_s25 + $0x50] ss:$8 sps:$4 sm:$0xff]  }
  0x62   : > { %744 = vmatpush1.bf16.msra.mxu0 %v1124_v8  ;;  %702 = vmatprep.subr.bf16.mxu1 %v1125_v9  ;;  %v1142_v20 = vld [vmem:[%s1543_s25 + $0x140] ss:$8 sps:$4 sm:$0xff]   ;;  %v1145_v22 = vld [vmem:[%s1543_s25 + $0x154] ss:$8 sps:$4 sm:$0xff]   ;;  %v1148_v24 = vld [vmem:[%s1543_s25 + $0x150] ss:$8 sps:$4 sm:$0xff]  }
  0x63   : > { %745 = vmatprep.subr.bf16.mxu0 %v1127_v10  ;;  %v1149_v25 = vld [vmem:[%s1543_s25 + $0x64] ss:$8 sps:$4 sm:$0xff]   ;;  %v1153_v27 = vld [vmem:[%s1543_s25 + $0x60] ss:$8 sps:$4 sm:$0xff]   ;;  %v1155_v29 = vld [vmem:[%s1543_s25 + $0x74] ss:$8 sps:$4 sm:$0xff]  }
  0x64   : > { %v1151_v26 = vld [vmem:[%s1543_s25 + $0x164] ss:$8 sps:$4 sm:$0xff]   ;;  %v1154_v28 = vld [vmem:[%s1543_s25 + $0x160] ss:$8 sps:$4 sm:$0xff]   ;;  %v1157_v30 = vld [vmem:[%s1543_s25 + $0x174] ss:$8 sps:$4 sm:$0xff]  }
  0x65   : > { %703 = vmatpush1.bf16.msra.mxu1 %v1129_v11  ;;  %v1159_v31 = vld [vmem:[%s1543_s25 + $0x70] ss:$8 sps:$4 sm:$0xff]   ;;  %v1161_v33 = vld [vmem:[%s1543_s25 + $0x84] ss:$8 sps:$4 sm:$0xff]   ;;  %v1165_v35 = vld [vmem:[%s1543_s25 + $0x80] ss:$8 sps:$4 sm:$0xff]  }
  0x66   : > { %746 = vmatpush1.bf16.msra.mxu0 %v1130_v12  ;;  %704 = vmatprep.subr.bf16.mxu1 %v1131_v13  ;;  %v1160_v32 = vld [vmem:[%s1543_s25 + $0x170] ss:$8 sps:$4 sm:$0xff]   ;;  %v1163_v34 = vld [vmem:[%s1543_s25 + $0x184] ss:$8 sps:$4 sm:$0xff]   ;;  %v1166_v36 = vld [vmem:[%s1543_s25 + $0x180] ss:$8 sps:$4 sm:$0xff]  }
  0x67   : > { %747 = vmatprep.subr.bf16.mxu0 %v1133_v14  ;;  %v1167_v37 = vld [vmem:[%s1543_s25 + $0x94] ss:$8 sps:$4 sm:$0xff]   ;;  %v1171_v39 = vld [vmem:[%s1543_s25 + $0x90] ss:$8 sps:$4 sm:$0xff]   ;;  %v1173_v41 = vld [vmem:[%s1543_s25 + $0xa4] ss:$8 sps:$4 sm:$0xff]  }
  0x68   : > { %v1169_v38 = vld [vmem:[%s1543_s25 + $0x194] ss:$8 sps:$4 sm:$0xff]   ;;  %v1172_v40 = vld [vmem:[%s1543_s25 + $0x190] ss:$8 sps:$4 sm:$0xff]   ;;  %v1175_v42 = vld [vmem:[%s1543_s25 + $0x1a4] ss:$8 sps:$4 sm:$0xff]  }
  0x69   : > { %705 = vmatpush1.bf16.msra.mxu1 %v1135_v15  ;;  %v1177_v43 = vld [vmem:[%s1543_s25 + $0xa0] ss:$8 sps:$4 sm:$0xff]   ;;  %v1179_v45 = vld [vmem:[%s1543_s25 + $0xb4] ss:$8 sps:$4 sm:$0xff]   ;;  %v1183_v47 = vld [vmem:[%s1543_s25 + $0xb0] ss:$8 sps:$4 sm:$0xff]  }
  0x6a   : > { %748 = vmatpush1.bf16.msra.mxu0 %v1136_v16  ;;  %706 = vmatprep.subr.bf16.mxu1 %v1137_v17  ;;  %v1178_v44 = vld [vmem:[%s1543_s25 + $0x1a0] ss:$8 sps:$4 sm:$0xff]   ;;  %v1181_v46 = vld [vmem:[%s1543_s25 + $0x1b4] ss:$8 sps:$4 sm:$0xff]   ;;  %v1184_v49 = vld [vmem:[%s1543_s25 + $0x1b0] ss:$8 sps:$4 sm:$0xff]  }
  0x6b   : > { %749 = vmatprep.subr.bf16.mxu0 %v1139_v18  ;;  %v1211_v48 = vld [vmem:[%s1537_s27 + $0x4] ss:$16 sps:$4 sm:$0xff]   ;;  %v1214_v52 = vld [vmem:[%s1537_s27 + $0xc] ss:$16 sps:$4 sm:$0xff]   ;;  %v1189_v53 = vld [vmem:[%s1543_s25 + $0xc0] ss:$8 sps:$4 sm:$0xff]  }
  0x6c   : > { %v1185_v50 = vld [vmem:[%s1543_s25 + $0xc4] ss:$8 sps:$4 sm:$0xff]   ;;  %730 = vmatprep.mubr.bf16.mxu1 %v1211_v48  ;;  %773 = vmatprep.mubr.bf16.mxu0 %v1214_v52  ;;  %v1190_v54 = vld [vmem:[%s1543_s25 + $0x1c0] ss:$8 sps:$4 sm:$0xff]   ;;  %v1191_v55 = vld [vmem:[%s1543_s25 + $0xd4] ss:$8 sps:$4 sm:$0xff]  }
  0x6d   : > { %707 = vmatpush1.bf16.msra.mxu1 %v1141_v19  ;;  %v1187_v51 = vld [vmem:[%s1543_s25 + $0x1c4] ss:$8 sps:$4 sm:$0xff]   ;;  %v1193_v56 = vld [vmem:[%s1543_s25 + $0x1d4] ss:$8 sps:$4 sm:$0xff]   ;;  %v1195_v57 = vld [vmem:[%s1543_s25 + $0xd0] ss:$8 sps:$4 sm:$0xff]  }
  0x6e   : > { %750 = vmatpush1.bf16.msra.mxu0 %v1142_v20  ;;  %708 = vmatprep.subr.bf16.mxu1 %v1143_v21  ;;  %v1196_v58 = vld [vmem:[%s1543_s25 + $0x1d0] ss:$8 sps:$4 sm:$0xff]   ;;  %v1197_v59 = vld [vmem:[%s1543_s25 + $0xe4] ss:$8 sps:$4 sm:$0xff]   ;;  %v1201_v61 = vld [vmem:[%s1543_s25 + $0xe0] ss:$8 sps:$4 sm:$0xff]  }
  0x6f   : > { %751 = vmatprep.subr.bf16.mxu0 %v1145_v22  ;;  %v1199_v60 = vld [vmem:[%s1543_s25 + $0x1e4] ss:$8 sps:$4 sm:$0xff]   ;;  %v1202_v62 = vld [vmem:[%s1543_s25 + $0x1e0] ss:$8 sps:$4 sm:$0xff]   ;;  %v1203_v63 = vld [vmem:[%s1543_s25 + $0xf4] ss:$8 sps:$4 sm:$0xff]  }
  0x70   : > { %v1205_v0 = vld [vmem:[%s1543_s25 + $0x1f4] ss:$8 sps:$4 sm:$0xff]   ;;  %v1207_v1 = vld [vmem:[%s1543_s25 + $0xf0] ss:$8 sps:$4 sm:$0xff]   ;;  %v290_v6 = vld [vmem:[#allocation2] sm:$0xff]  ;;  %p1026_p12 = scmp.ne.s32.totalorder %s1351_s15, 1 }
  0x71   : > { %709 = vmatpush1.bf16.msra.mxu1 %v1147_v23  ;;  %v1208_v2 = vld [vmem:[%s1543_s25 + $0x1f0] ss:$8 sps:$4 sm:$0xff]   ;;  %v291_v10 = vld [vmem:[#allocation2 + $0x8] sm:$0xff] }
  0x72   : > { %752 = vmatpush1.bf16.msra.mxu0 %v1148_v24  ;;  %710 = vmatprep.subr.bf16.mxu1 %v1149_v25  ;;  %v1209_v3 = vld [vmem:[%s1537_s27] ss:$16 sps:$4 sm:$0xff]   ;;  %v1212_v4 = vld [vmem:[%s1537_s27 + $0x8] ss:$16 sps:$4 sm:$0xff]   ;;  %v802_v25 = vlaneseq (!%p1026_p12) }
  0x73   : > { %753 = vmatprep.subr.bf16.mxu0 %v1151_v26  ;;  %v292_v14 = vld [vmem:[#allocation2 + $0x10] sm:$0xff]  ;;  %v293_v19 = vld [vmem:[#allocation2 + $0x18] sm:$0xff] }
  0x74   : > { %v803_v26 = vshrl.u32 (!%p1026_p12), %v802_v25, 7 }
  0x75   : > { %711 = vmatpush1.bf16.msra.mxu1 %v1153_v27  ;;  %v800_v27 = vld [vmem:[%s1670_s2] sm:$0x3] (!%p1026_p12) }
  0x76   : > { %754 = vmatpush1.bf16.msra.mxu0 %v1154_v28  ;;  %712 = vmatprep.subr.bf16.mxu1 %v1155_v29  ;;  %v804_v29 = vsub.s32 (!%p1026_p12), 0, %v803_v26 }
  0x77   : > { %755 = vmatprep.subr.bf16.mxu0 %v1157_v30  ;;  %v808_v30 = vsub.s32 (!%p1026_p12), 1, %v803_v26 }
  0x79   : > { %713 = vmatpush1.bf16.msra.mxu1 %v1159_v31 }
  0x7a   : > { %756 = vmatpush1.bf16.msra.mxu0 %v1160_v32  ;;  %714 = vmatprep.subr.bf16.mxu1 %v1161_v33 }
  0x7b   : > { %757 = vmatprep.subr.bf16.mxu0 %v1163_v34  ;;  %v805_v34 = vrot.slane (!%p1026_p12), %v800_v27, %v804_v29 }
  0x7d   : > { %715 = vmatpush1.bf16.msra.mxu1 %v1165_v35  ;;  %v809_v35 = vrot.slane (!%p1026_p12), %v800_v27, %v808_v30 }
  0x7e   : > { %758 = vmatpush1.bf16.msra.mxu0 %v1166_v36  ;;  %716 = vmatprep.subr.bf16.mxu1 %v1167_v37 }
  0x7f   : > { %759 = vmatprep.subr.bf16.mxu0 %v1169_v38 }
  0x81   : > { %717 = vmatpush1.bf16.msra.mxu1 %v1171_v39 }
  0x82   : > { %760 = vmatpush1.bf16.msra.mxu0 %v1172_v40  ;;  %718 = vmatprep.subr.bf16.mxu1 %v1173_v41 }
  0x83   : > { %761 = vmatprep.subr.bf16.mxu0 %v1175_v42 }
  0x85   : > { %719 = vmatpush1.bf16.msra.mxu1 %v1177_v43 }
  0x86   : > { %762 = vmatpush1.bf16.msra.mxu0 %v1178_v44  ;;  %720 = vmatprep.subr.bf16.mxu1 %v1179_v45 }
  0x87   : > { %763 = vmatprep.subr.bf16.mxu0 %v1181_v46 }
  0x89   : > { %721 = vmatpush1.bf16.msra.mxu1 %v1183_v47 }
  0x8a   : > { %764 = vmatpush1.bf16.msra.mxu0 %v1184_v49  ;;  %722 = vmatprep.subr.bf16.mxu1 %v1185_v50 }
  0x8b   : > { %765 = vmatprep.subr.bf16.mxu0 %v1187_v51 }
  0x8d   : > { %723 = vmatpush1.bf16.msra.mxu1 %v1189_v53 }
  0x8e   : > { %766 = vmatpush1.bf16.msra.mxu0 %v1190_v54  ;;  %724 = vmatprep.subr.bf16.mxu1 %v1191_v55 }
  0x8f   : > { %767 = vmatprep.subr.bf16.mxu0 %v1193_v56 }
  0x91   : > { %725 = vmatpush1.bf16.msra.mxu1 %v1195_v57 }
  0x92   : > { %768 = vmatpush1.bf16.msra.mxu0 %v1196_v58  ;;  %726 = vmatprep.subr.bf16.mxu1 %v1197_v59 }
  0x93   : > { %769 = vmatprep.subr.bf16.mxu0 %v1199_v60 }
  0x95   : > { %727 = vmatpush1.bf16.msra.mxu1 %v1201_v61 }
  0x96   : > { %770 = vmatpush1.bf16.msra.mxu0 %v1202_v62  ;;  %728 = vmatprep.subr.bf16.mxu1 %v1203_v63 }
  0x97   : > { %771 = vmatprep.subr.bf16.mxu0 %v1205_v0 }
  0x99   : > { %729 = vmatpush1.bf16.msra.mxu1 %v1207_v1 }
  0x9a   : > { %772 = vmatpush1.bf16.msra.mxu0 %v1208_v2 }
  0x9c   : > { %731 = vmatmul.mubr.bf16.vlgmr.msra.gmra.mrb[0].mxu1 %v1209_v3 }
  0x9d   : > { %774 = vmatmul.mubr.bf16.vlgmr.msra.gmra.mrb[0].mxu0 %v1212_v4 }
 0x16f   : > { %v732_v5 = vpop.f32.mrb[0].mxu1 }
 0x170   : > { %v775_v7 = vpop.f32.mrb[0].mxu0  ;;  %v734_v9 = vpop.f32.mrb[1].mxu1 }
 0x171   : > { %v776_v8 = vadd.f32 %v775_v7, %v732_v5  ;;  %v777_v11 = vpop.f32.mrb[1].mxu0  ;;  %v736_v13 = vpop.f32.mrb[2].mxu1 }
 0x172   : > { %v778_v12 = vadd.f32 %v777_v11, %v734_v9  ;;  %v779_v15 = vpop.f32.mrb[2].mxu0  ;;  %v738_v18 = vpop.f32.mrb[3].mxu1  ;;  %795 = sbr.rel (%p1026_p12) target bundleno = 387 (0x183), region = 48 }
 0x173   : > { %v784_v16 = vadd.f32 %v776_v8, %v290_v6  ;;  %v780_v17 = vadd.f32 %v779_v15, %v736_v13  ;;  %v781_v20 = vpop.f32.mrb[3].mxu0 }
 0x174   : > { %v785_v21 = vadd.f32 %v778_v12, %v291_v10  ;;  %v782_v22 = vadd.f32 %v781_v20, %v738_v18 }
 0x175   : > { %788 = vst [vmem:[#allocation2] sm:$0xff] %v784_v16  ;;  %v786_v23 = vadd.f32 %v780_v17, %v292_v14 }
 0x176   : > { %789 = vst [vmem:[#allocation2 + $0x8] sm:$0xff] %v785_v21  ;;  %v787_v24 = vadd.f32 %v782_v22, %v293_v19 }
 0x177   : > { %790 = vst [vmem:[#allocation2 + $0x10] sm:$0xff] %v786_v23 }
 0x178   : > { %791 = vst [vmem:[#allocation2 + $0x18] sm:$0xff] %v787_v24 }
 0x17c   : > { %v796_v28 = vld [vmem:[#allocation2] sm:$0xff] }
 0x17d   : > { %v797_v31 = vld [vmem:[#allocation2 + $0x8] sm:$0xff]  ;;  %v812_v36 = vadd.f32 %v805_v34, %v796_v28 }
 0x17e   : > { %v798_v32 = vld [vmem:[#allocation2 + $0x10] sm:$0xff]  ;;  %v813_v37 = vadd.f32 %v809_v35, %v797_v31 }
 0x17f   : > { %v799_v33 = vld [vmem:[#allocation2 + $0x18] sm:$0xff]  ;;  %v814_v38 = vadd.f32 %v805_v34, %v798_v32  ;;  %816 = vst [vmem:[#allocation8] sm:$0xff] %v812_v36 }
 0x180   : > { %v815_v39 = vadd.f32 %v809_v35, %v799_v33  ;;  %817 = vst [vmem:[#allocation8 + $0x8] sm:$0xff] %v813_v37 }
 0x181   : > { %818 = vst [vmem:[#allocation8 + $0x10] sm:$0xff] %v814_v38 }
 0x182   : > { %819 = vst [vmem:[#allocation8 + $0x18] sm:$0xff] %v815_v39 }
 0x183 PF: > { %p1624_p4 = scmp.eq.s32.totalorder %s943_s18, 1  ;;  %s1369_s20 = smov [#allocation8]  }
 0x184   : > { %s832_s22 = sshll.u32 %s1369_s20, 4  ;;  %s833_s22 = int_to_ptr.vmem [resolvable:$true] %s832_s22 }
 0x185   : > { %s1275_s30 = scalar_lea.vmem %s833_s22, 512  ;;  %p1282_p0 = scmp.lt.s32.totalorder %s833_s22, %s833_s22 }
 0x186   : > { %p1276_p8 = scmp.ne.s32.totalorder %s833_s22, %s1275_s30  ;;  %p1283_p10 = scmp.lt.s32.totalorder %s1275_s30, %s1275_s30 }
 0x188   : > { %p1277_p2 = pnand %p1276_p8, %p1624_p4  ;;  %p1284_p5 = por %p1283_p10, %p1282_p0 }
 0x18a   : > { %p1278_p3 = pneg %p1277_p2 }
 0x18c   : > { %p1285_p6 = pnand %p1284_p5, %p1278_p3 }
 0x18e   : > { %1288 = shalt.err (!%p1285_p6)
}
 0x18f   : > { %s1289_s18 = scalar_lea.hbm %s1671_s3, 512 }
 0x190   : > { %p1290_p11 = scmp.ne.s32.totalorder %s1671_s3, %s1289_s18  ;;  %p1295_p7 = scmp.lt.u32.totalorder %s1289_s18, %s1671_s3 }
 0x192   : > { %p1291_p13 = pnand %p1290_p11, %p1624_p4 }
 0x194   : > { %p1292_p1 = pneg %p1291_p13 }
 0x196   : > { %p1297_p9 = pnand %p1295_p7, %p1292_p1 }
 0x198   : > { %1300 = shalt.err (!%p1297_p9)
}
 0x199   : > { %s1370_s21 = smov 256   ;;  %s1371_s5 = smov 16  }
 0x19a   : > { %1043 = dma.vmem_to_hbm [thread:$0]  (%p1624_p4), %s833_s22, 512, %s1671_s3, [#allocation5], %s1370_s21, %s1370_s21, %s1371_s5  }
 0x19b   : > { %1334 = dma.done.wait (%p1624_p4), [#allocation5], 512  }
 0x19c   : > { %1336 = vsyncadd (%p1624_p4), [#allocation5], 4294966784 }
 0x19d PF: > { %s20_s17 = sadd.s32 1, %s1359_s17   ;;  %s1680_s12 = smov %s1343_s13 }
 0x19e   : > { %p17_p12 = scmp.ge.s32.totalorder %s20_s17, 4   ;;  %s1681_s13 = smov %s1347_s14 }
 0x19f   : > { %s1682_s14 = smov %s1443_s24  ;;  %s1683_s15 = smov %s1355_s16 }
 0x1a0   : > { %s1684_s16 = smov %s1686_s19  ;;  %19 = sbr.rel (!%p17_p12) target bundleno = 7 (0x7), region = 94 }
 0x1a7   :  { %848 = vsyncpa [#allocation4], 1 }
 0x1a8   :  { %850 = vsyncpa [#allocation4 + $0x1], 1 }
 0x1a9   :  { %851 = vsyncpa [#allocation7], 1 }
 0x1aa   :  { %853 = vsyncpa [#allocation7 + $0x1], 1 }
 0x1ab   :  { %854 = vsyncpa [#allocation5], 1 }
 0x1ac   :  { %856 = vsyncpa [#allocation5 + $0x1], 1 }

</bundles_post_ra>
